<compile_context>
chip_gen: v7x
topology: tpu7x:2x2x1
jax: 0.10.0
libtpu: 0.0.40
codegen_flags: <defaults>
</compile_context>

<pallas_src>
import jax
import jax.numpy as jnp
import numpy as np
from jax.experimental import pallas as pl
from jax.experimental.pallas import tpu as pltpu

# Model constants: Conv2d(3, 32, 5, padding=4, dilation=3) -> Linear(448, 10)
C_IN, C_OUT, K, DIL, PAD = 3, 32, 5, 3, 4
F_OUT = 10
KK = C_IN * K * K          # 75 = im2col depth
KK_PAD = 128               # padded depth: 75 data + 1 bias column + 52 zeros
BIAS_COL = KK              # lane 75 carries the folded (bconv - 2.1)
F_PAD = 128                # lane-dense fc output (sliced to 10 in wrapper)


# ---------------------------------------------------------------------------
# Pallas kernel: fused conv-as-matmul (+folded bias) + ReLU + relayout + FC
# ---------------------------------------------------------------------------
def _fused_kernel(p_ref, w1_ref, wfc_ref, bfc_ref, out_ref, act_ref, fcin_ref):
    # p_ref   : (S*N, KK_PAD)    im2col patches, rows (s-major, n-minor), lane 75 == 1.0
    # w1_ref  : (KK_PAD, C_OUT)  conv weight, row 75 == bconv - 2.1
    # wfc_ref : (S*C_OUT, F_PAD) fc weight, rows ordered (s, c)
    # bfc_ref : (1, F_PAD)
    # out_ref : (N, F_PAD)
    # act_ref : scratch (S*N, C_OUT)
    # fcin_ref: scratch (N, S*C_OUT)
    n = out_ref.shape[0]
    s_total = act_ref.shape[0] // n

    # Single MXU matmul for the whole conv; bias rides on the 1.0 column.
    act_ref[...] = jnp.maximum(
        jnp.dot(p_ref[...], w1_ref[...], preferred_element_type=jnp.float32),
        0.0)

    # Relayout (S*N, C_OUT) -> (N, S*C_OUT): small VMEM copies, off the MXU path.
    for s in range(s_total):
        fcin_ref[:, s * C_OUT:(s + 1) * C_OUT] = act_ref[s * n:(s + 1) * n, :]

    # Single depth-448 MXU matmul for the FC layer.
    out_ref[...] = (
        jnp.dot(fcin_ref[...], wfc_ref[...], preferred_element_type=jnp.float32)
        + bfc_ref[...]).astype(out_ref.dtype)


# ---------------------------------------------------------------------------
# One-time weight prepacking (run eagerly, outside the jitted forward)
# ---------------------------------------------------------------------------
def prepack_params(wconv, bconv, wfc, bfc):
    # conv weight -> (KK_PAD, C_OUT); row BIAS_COL holds (bconv - 2.1).
    w1 = wconv.reshape(C_OUT, KK).T                              # (75, 32)
    bias_row = (bconv - 2.1).reshape(1, C_OUT)
    w1 = jnp.concatenate(
        [w1, bias_row, jnp.zeros((KK_PAD - KK - 1, C_OUT), w1.dtype)], axis=0)

    # fc weight: wfc[f, c*S + s] -> wfc2d[s*C_OUT + c, f], lane-padded to 128.
    S = wfc.shape[1] // C_OUT
    wfc2d = (wfc.reshape(F_OUT, C_OUT, S)
             .transpose(2, 1, 0)                                 # (S, C, F)
             .reshape(S * C_OUT, F_OUT))
    wfc2d = jnp.pad(wfc2d, ((0, 0), (0, F_PAD - F_OUT)))         # (448, 128)

    bfc_p = jnp.pad(bfc.reshape(1, F_OUT), ((0, 0), (0, F_PAD - F_OUT)))
    return w1, wfc2d, bfc_p


# ---------------------------------------------------------------------------
# Per-call glue: im2col of x as ONE fused gather (stays inside jit)
# ---------------------------------------------------------------------------
def _im2col(x):
    """x: (N, C, H, W) -> (S*N, KK_PAD); rows (s-major, n-minor),
    cols (c-major, (kh, kw)-minor); lane BIAS_COL == 1.0, rest of pad zero."""
    N, C, H, W = x.shape
    Ho = H + 2 * PAD - DIL * (K - 1)
    Wo = W + 2 * PAD - DIL * (K - 1)
    S = Ho * Wo
    Hp, Wp = H + 2 * PAD, W + 2 * PAD

    # Trace-time (numpy) index table into the padded (Hp*Wp) plane.
    koff = (np.arange(K).repeat(K) * DIL) * Wp + np.tile(np.arange(K), K) * DIL
    base = (np.arange(S) // Wo) * Wp + (np.arange(S) % Wo)
    idx = jnp.asarray(base[:, None] + koff[None, :], dtype=jnp.int32)   # (S, 25)

    xp = jnp.pad(x, ((0, 0), (0, 0), (PAD, PAD), (PAD, PAD)))
    xp = xp.reshape(N, C, Hp * Wp)
    p = xp[:, :, idx]                                 # (N, C, S, 25) single gather
    p = p.transpose(2, 0, 1, 3).reshape(S * N, KK)    # rows (s,n), cols (c,kh,kw)
    ones = jnp.ones((S * N, 1), p.dtype)              # bias column
    zeros = jnp.zeros((S * N, KK_PAD - KK - 1), p.dtype)
    return jnp.concatenate([p, ones, zeros], axis=1)  # (S*N, 128)


@jax.jit
def model_forward(x, w1, wfc2d, bfc_p):
    p = _im2col(x)                                    # (S*N, KK_PAD)
    N = x.shape[0]
    SN = p.shape[0]
    S = SN // N

    cost = pl.CostEstimate(
        flops=2 * SN * KK_PAD * C_OUT + 2 * N * (S * C_OUT) * F_PAD,
        transcendentals=0,
        bytes_accessed=4 * (p.size + w1.size + wfc2d.size + bfc_p.size
                            + N * F_PAD),
    )

    out = pl.pallas_call(
        _fused_kernel,
        out_shape=jax.ShapeDtypeStruct((N, F_PAD), jnp.float32),
        grid=(1,),
        in_specs=[
            pl.BlockSpec(p.shape, lambda i: (0, 0)),
            pl.BlockSpec(w1.shape, lambda i: (0, 0)),
            pl.BlockSpec(wfc2d.shape, lambda i: (0, 0)),
            pl.BlockSpec(bfc_p.shape, lambda i: (0, 0)),
        ],
        out_specs=pl.BlockSpec((N, F_PAD), lambda i: (0, 0)),
        scratch_shapes=[
            pltpu.VMEM((SN, C_OUT), jnp.float32),        # act scratch
            pltpu.VMEM((N, S * C_OUT), jnp.float32),     # fc input scratch
        ],
        compiler_params=pltpu.CompilerParams(
            dimension_semantics=("arbitrary",)),
        cost_estimate=cost,
    )(p, w1, wfc2d, bfc_p)
    return out[:, :F_OUT]


# ---------------------------------------------------------------------------
# Plain-JAX reference mirroring the PyTorch forward
# ---------------------------------------------------------------------------
def _reference(x, wconv, bconv, wfc, bfc):
    v1 = jax.lax.conv_general_dilated(
        x, wconv, window_strides=(1, 1), padding=((PAD, PAD), (PAD, PAD)),
        rhs_dilation=(DIL, DIL), dimension_numbers=("NCHW", "OIHW", "NCHW"))
    v1 = v1 + bconv[None, :, None, None]
    v3 = jnp.maximum(v1 - 2.1, 0.0)
    v4 = v3.reshape(x.shape[0], -1)
    return v4 @ wfc.T + bfc


if __name__ == "__main__":
    # Input spatial size must satisfy 32*(H-4)*(W-4) == 448  ->  (H, W) = (11, 6)
    N, H, W = 2, 11, 6
    key = jax.random.PRNGKey(0)
    kx, kw1, kb1, kw2, kb2 = jax.random.split(key, 5)

    x = jax.random.normal(kx, (N, C_IN, H, W), dtype=jnp.float32)
    wconv = jax.random.normal(kw1, (C_OUT, C_IN, K, K), dtype=jnp.float32) * 0.1
    bconv = jax.random.normal(kb1, (C_OUT,), dtype=jnp.float32) * 0.1
    wfc = jax.random.normal(kw2, (F_OUT, 448), dtype=jnp.float32) * 0.05
    bfc = jax.random.normal(kb2, (F_OUT,), dtype=jnp.float32) * 0.05

    # One-time prepack (outside the jitted per-call path).
    w1, wfc2d, bfc_p = prepack_params(wconv, bconv, wfc, bfc)
    w1, wfc2d, bfc_p = jax.block_until_ready((w1, wfc2d, bfc_p))

    out = jax.block_until_ready(model_forward(x, w1, wfc2d, bfc_p))

    ref = _reference(x, wconv, bconv, wfc, bfc)
    assert out.shape == (N, F_OUT), out.shape
    assert jnp.allclose(out, ref, rtol=1e-3, atol=1e-3), (
        f"max abs err {jnp.max(jnp.abs(out - ref))}")

    print("KERNEL_OK")
</pallas_src>

<mosaic_0001>
module attributes {stable_mosaic.version = 11 : i64} {
  func.func @_fused_kernel(%arg0: i32, %arg1: memref<28x128xf32, #tpu.memory_space<vmem>>, %arg2: memref<128x32xf32, #tpu.memory_space<vmem>>, %arg3: memref<448x128xf32, #tpu.memory_space<vmem>>, %arg4: memref<1x128xf32, #tpu.memory_space<vmem>>, %arg5: memref<2x128xf32, #tpu.memory_space<vmem>>, %arg6: memref<28x32xf32, #tpu.memory_space<vmem>>, %arg7: memref<2x448xf32, #tpu.memory_space<vmem>>) attributes {dimension_semantics = [#tpu.dimension_semantics<arbitrary>], iteration_bounds = array<i64: 1>, scalar_prefetch = 0 : i64, scratch_operands = 2 : i64, tpu.core_type = #tpu.core_type<tc>, window_params = [{pipeline_mode = #tpu.pipeline_mode<synchronous>, transform_indices = @transform_0, window_bounds = array<i64: 28, 128>}, {pipeline_mode = #tpu.pipeline_mode<synchronous>, transform_indices = @transform_1, window_bounds = array<i64: 128, 32>}, {pipeline_mode = #tpu.pipeline_mode<synchronous>, transform_indices = @transform_2, window_bounds = array<i64: 448, 128>}, {pipeline_mode = #tpu.pipeline_mode<synchronous>, transform_indices = @transform_3, window_bounds = array<i64: 1, 128>}, {pipeline_mode = #tpu.pipeline_mode<synchronous>, transform_indices = @transform_4, window_bounds = array<i64: 2, 128>}]} {
    %c0 = arith.constant 0 : index
    %c0_0 = arith.constant 0 : index
    %0 = vector.load %arg1[%c0, %c0_0] : memref<28x128xf32, #tpu.memory_space<vmem>>, vector<28x128xf32>
    %c0_1 = arith.constant 0 : index
    %c0_2 = arith.constant 0 : index
    %1 = vector.load %arg2[%c0_1, %c0_2] : memref<128x32xf32, #tpu.memory_space<vmem>>, vector<128x32xf32>
    %cst = arith.constant dense<0.000000e+00> : vector<28x32xf32>
    %2 = tpu.matmul %0, %1, %cst {dimension_numbers = #tpu.dot_dimension_numbers<[1], [0], [0], [1], [0, 0, 1, 1], [], []>} : vector<28x128xf32>, vector<128x32xf32>, vector<28x32xf32> -> vector<28x32xf32>
    %cst_3 = arith.constant 0.000000e+00 : f32
    %3 = vector.broadcast %cst_3 : f32 to vector<28x32xf32>
    %4 = arith.maximumf %2, %3 : vector<28x32xf32>
    %c0_4 = arith.constant 0 : index
    %c0_5 = arith.constant 0 : index
    %5 = vector.load %arg6[%c0_4, %c0_5] : memref<28x32xf32, #tpu.memory_space<vmem>>, vector<28x32xf32>
    tpu.vector_store %arg6[%c0_4, %c0_5], %4 {strides = array<i32>} : memref<28x32xf32, #tpu.memory_space<vmem>>, vector<28x32xf32>,
    %c0_6 = arith.constant 0 : index
    %c0_7 = arith.constant 0 : index
    %6 = vector.load %arg6[%c0_6, %c0_7] : memref<28x32xf32, #tpu.memory_space<vmem>>, vector<2x32xf32>
    %c0_8 = arith.constant 0 : index
    %c0_9 = arith.constant 0 : index
    %7 = vector.load %arg7[%c0_8, %c0_9] : memref<2x448xf32, #tpu.memory_space<vmem>>, vector<2x32xf32>
    tpu.vector_store %arg7[%c0_8, %c0_9], %6 {strides = array<i32>} : memref<2x448xf32, #tpu.memory_space<vmem>>, vector<2x32xf32>,
    %c2 = arith.constant 2 : index
    %c0_10 = arith.constant 0 : index
    %8 = vector.load %arg6[%c2, %c0_10] : memref<28x32xf32, #tpu.memory_space<vmem>>, vector<2x32xf32>
    %c0_11 = arith.constant 0 : index
    %c32 = arith.constant 32 : index
    %9 = vector.load %arg7[%c0_11, %c32] : memref<2x448xf32, #tpu.memory_space<vmem>>, vector<2x32xf32>
    tpu.vector_store %arg7[%c0_11, %c32], %8 {strides = array<i32>} : memref<2x448xf32, #tpu.memory_space<vmem>>, vector<2x32xf32>,
    %c4 = arith.constant 4 : index
    %c0_12 = arith.constant 0 : index
    %10 = vector.load %arg6[%c4, %c0_12] : memref<28x32xf32, #tpu.memory_space<vmem>>, vector<2x32xf32>
    %c0_13 = arith.constant 0 : index
    %c64 = arith.constant 64 : index
    %11 = vector.load %arg7[%c0_13, %c64] : memref<2x448xf32, #tpu.memory_space<vmem>>, vector<2x32xf32>
    tpu.vector_store %arg7[%c0_13, %c64], %10 {strides = array<i32>} : memref<2x448xf32, #tpu.memory_space<vmem>>, vector<2x32xf32>,
    %c6 = arith.constant 6 : index
    %c0_14 = arith.constant 0 : index
    %12 = vector.load %arg6[%c6, %c0_14] : memref<28x32xf32, #tpu.memory_space<vmem>>, vector<2x32xf32>
    %c0_15 = arith.constant 0 : index
    %c96 = arith.constant 96 : index
    %13 = vector.load %arg7[%c0_15, %c96] : memref<2x448xf32, #tpu.memory_space<vmem>>, vector<2x32xf32>
    tpu.vector_store %arg7[%c0_15, %c96], %12 {strides = array<i32>} : memref<2x448xf32, #tpu.memory_space<vmem>>, vector<2x32xf32>,
    %c8 = arith.constant 8 : index
    %c0_16 = arith.constant 0 : index
    %14 = vector.load %arg6[%c8, %c0_16] : memref<28x32xf32, #tpu.memory_space<vmem>>, vector<2x32xf32>
    %c0_17 = arith.constant 0 : index
    %c128 = arith.constant 128 : index
    %15 = vector.load %arg7[%c0_17, %c128] : memref<2x448xf32, #tpu.memory_space<vmem>>, vector<2x32xf32>
    tpu.vector_store %arg7[%c0_17, %c128], %14 {strides = array<i32>} : memref<2x448xf32, #tpu.memory_space<vmem>>, vector<2x32xf32>,
    %c10 = arith.constant 10 : index
    %c0_18 = arith.constant 0 : index
    %16 = vector.load %arg6[%c10, %c0_18] : memref<28x32xf32, #tpu.memory_space<vmem>>, vector<2x32xf32>
    %c0_19 = arith.constant 0 : index
    %c160 = arith.constant 160 : index
    %17 = vector.load %arg7[%c0_19, %c160] : memref<2x448xf32, #tpu.memory_space<vmem>>, vector<2x32xf32>
    tpu.vector_store %arg7[%c0_19, %c160], %16 {strides = array<i32>} : memref<2x448xf32, #tpu.memory_space<vmem>>, vector<2x32xf32>,
    %c12 = arith.constant 12 : index
    %c0_20 = arith.constant 0 : index
    %18 = vector.load %arg6[%c12, %c0_20] : memref<28x32xf32, #tpu.memory_space<vmem>>, vector<2x32xf32>
    %c0_21 = arith.constant 0 : index
    %c192 = arith.constant 192 : index
    %19 = vector.load %arg7[%c0_21, %c192] : memref<2x448xf32, #tpu.memory_space<vmem>>, vector<2x32xf32>
    tpu.vector_store %arg7[%c0_21, %c192], %18 {strides = array<i32>} : memref<2x448xf32, #tpu.memory_space<vmem>>, vector<2x32xf32>,
    %c14 = arith.constant 14 : index
    %c0_22 = arith.constant 0 : index
    %20 = vector.load %arg6[%c14, %c0_22] : memref<28x32xf32, #tpu.memory_space<vmem>>, vector<2x32xf32>
    %c0_23 = arith.constant 0 : index
    %c224 = arith.constant 224 : index
    %21 = vector.load %arg7[%c0_23, %c224] : memref<2x448xf32, #tpu.memory_space<vmem>>, vector<2x32xf32>
    tpu.vector_store %arg7[%c0_23, %c224], %20 {strides = array<i32>} : memref<2x448xf32, #tpu.memory_space<vmem>>, vector<2x32xf32>,
    %c16 = arith.constant 16 : index
    %c0_24 = arith.constant 0 : index
    %22 = vector.load %arg6[%c16, %c0_24] : memref<28x32xf32, #tpu.memory_space<vmem>>, vector<2x32xf32>
    %c0_25 = arith.constant 0 : index
    %c256 = arith.constant 256 : index
    %23 = vector.load %arg7[%c0_25, %c256] : memref<2x448xf32, #tpu.memory_space<vmem>>, vector<2x32xf32>
    tpu.vector_store %arg7[%c0_25, %c256], %22 {strides = array<i32>} : memref<2x448xf32, #tpu.memory_space<vmem>>, vector<2x32xf32>,
    %c18 = arith.constant 18 : index
    %c0_26 = arith.constant 0 : index
    %24 = vector.load %arg6[%c18, %c0_26] : memref<28x32xf32, #tpu.memory_space<vmem>>, vector<2x32xf32>
    %c0_27 = arith.constant 0 : index
    %c288 = arith.constant 288 : index
    %25 = vector.load %arg7[%c0_27, %c288] : memref<2x448xf32, #tpu.memory_space<vmem>>, vector<2x32xf32>
    tpu.vector_store %arg7[%c0_27, %c288], %24 {strides = array<i32>} : memref<2x448xf32, #tpu.memory_space<vmem>>, vector<2x32xf32>,
    %c20 = arith.constant 20 : index
    %c0_28 = arith.constant 0 : index
    %26 = vector.load %arg6[%c20, %c0_28] : memref<28x32xf32, #tpu.memory_space<vmem>>, vector<2x32xf32>
    %c0_29 = arith.constant 0 : index
    %c320 = arith.constant 320 : index
    %27 = vector.load %arg7[%c0_29, %c320] : memref<2x448xf32, #tpu.memory_space<vmem>>, vector<2x32xf32>
    tpu.vector_store %arg7[%c0_29, %c320], %26 {strides = array<i32>} : memref<2x448xf32, #tpu.memory_space<vmem>>, vector<2x32xf32>,
    %c22 = arith.constant 22 : index
    %c0_30 = arith.constant 0 : index
    %28 = vector.load %arg6[%c22, %c0_30] : memref<28x32xf32, #tpu.memory_space<vmem>>, vector<2x32xf32>
    %c0_31 = arith.constant 0 : index
    %c352 = arith.constant 352 : index
    %29 = vector.load %arg7[%c0_31, %c352] : memref<2x448xf32, #tpu.memory_space<vmem>>, vector<2x32xf32>
    tpu.vector_store %arg7[%c0_31, %c352], %28 {strides = array<i32>} : memref<2x448xf32, #tpu.memory_space<vmem>>, vector<2x32xf32>,
    %c24 = arith.constant 24 : index
    %c0_32 = arith.constant 0 : index
    %30 = vector.load %arg6[%c24, %c0_32] : memref<28x32xf32, #tpu.memory_space<vmem>>, vector<2x32xf32>
    %c0_33 = arith.constant 0 : index
    %c384 = arith.constant 384 : index
    %31 = vector.load %arg7[%c0_33, %c384] : memref<2x448xf32, #tpu.memory_space<vmem>>, vector<2x32xf32>
    tpu.vector_store %arg7[%c0_33, %c384], %30 {strides = array<i32>} : memref<2x448xf32, #tpu.memory_space<vmem>>, vector<2x32xf32>,
    %c26 = arith.constant 26 : index
    %c0_34 = arith.constant 0 : index
    %32 = vector.load %arg6[%c26, %c0_34] : memref<28x32xf32, #tpu.memory_space<vmem>>, vector<2x32xf32>
    %c0_35 = arith.constant 0 : index
    %c416 = arith.constant 416 : index
    %33 = vector.load %arg7[%c0_35, %c416] : memref<2x448xf32, #tpu.memory_space<vmem>>, vector<2x32xf32>
    tpu.vector_store %arg7[%c0_35, %c416], %32 {strides = array<i32>} : memref<2x448xf32, #tpu.memory_space<vmem>>, vector<2x32xf32>,
    %c0_36 = arith.constant 0 : index
    %c0_37 = arith.constant 0 : index
    %34 = vector.load %arg7[%c0_36, %c0_37] : memref<2x448xf32, #tpu.memory_space<vmem>>, vector<2x448xf32>
    %c0_38 = arith.constant 0 : index
    %c0_39 = arith.constant 0 : index
    %35 = vector.load %arg3[%c0_38, %c0_39] : memref<448x128xf32, #tpu.memory_space<vmem>>, vector<448x128xf32>
    %cst_40 = arith.constant dense<0.000000e+00> : vector<2x128xf32>
    %36 = tpu.matmul %34, %35, %cst_40 {dimension_numbers = #tpu.dot_dimension_numbers<[1], [0], [0], [1], [0, 0, 1, 1], [], []>} : vector<2x448xf32>, vector<448x128xf32>, vector<2x128xf32> -> vector<2x128xf32>
    %c0_41 = arith.constant 0 : index
    %c0_42 = arith.constant 0 : index
    %37 = vector.load %arg4[%c0_41, %c0_42] : memref<1x128xf32, #tpu.memory_space<vmem>>, vector<1x128xf32>
    %38 = vector.broadcast %37 : vector<1x128xf32> to vector<2x128xf32>
    %39 = arith.addf %36, %38 : vector<2x128xf32>
    %c0_43 = arith.constant 0 : index
    %c0_44 = arith.constant 0 : index
    %40 = vector.load %arg5[%c0_43, %c0_44] : memref<2x128xf32, #tpu.memory_space<vmem>>, vector<2x128xf32>
    tpu.vector_store %arg5[%c0_43, %c0_44], %39 {strides = array<i32>} : memref<2x128xf32, #tpu.memory_space<vmem>>, vector<2x128xf32>,
    return
  }
  func.func @transform_0(%arg0: i32) -> (i32, i32) {
    %c0_i32 = arith.constant 0 : i32
    %c0_i32_0 = arith.constant 0 : i32
    %c0_i32_1 = arith.constant 0 : i32
    return %c0_i32, %c0_i32_0 : i32, i32
  }
  func.func @transform_1(%arg0: i32) -> (i32, i32) {
    %c0_i32 = arith.constant 0 : i32
    %c0_i32_0 = arith.constant 0 : i32
    %c0_i32_1 = arith.constant 0 : i32
    return %c0_i32, %c0_i32_0 : i32, i32
  }
  func.func @transform_2(%arg0: i32) -> (i32, i32) {
    %c0_i32 = arith.constant 0 : i32
    %c0_i32_0 = arith.constant 0 : i32
    %c0_i32_1 = arith.constant 0 : i32
    return %c0_i32, %c0_i32_0 : i32, i32
  }
  func.func @transform_3(%arg0: i32) -> (i32, i32) {
    %c0_i32 = arith.constant 0 : i32
    %c0_i32_0 = arith.constant 0 : i32
    %c0_i32_1 = arith.constant 0 : i32
    return %c0_i32, %c0_i32_0 : i32, i32
  }
  func.func @transform_4(%arg0: i32) -> (i32, i32) {
    %c0_i32 = arith.constant 0 : i32
    %c0_i32_0 = arith.constant 0 : i32
    %c0_i32_1 = arith.constant 0 : i32
    return %c0_i32, %c0_i32_0 : i32, i32
  }
}

</mosaic_0001>

<bundles_post_ra>
// kernel: model_forward.1
= control target key start
LH: loop header
LB: loop body
LE: loop exit
PB: predicated region body
PF: predicated region fallthrough
CT: control target
= control target key end

     0   :  { %s1064_s0 = inlined_call_operand.vmem [shape: f32[28,128], index: 0, kind: input, shape index: {}]   ;;  %s1065_s1 = inlined_call_operand.vmem [shape: f32[128,32], index: 1, kind: input, shape index: {}]   ;;  %s1066_s2 = inlined_call_operand.vmem [shape: f32[448,128], index: 2, kind: input, shape index: {}]   ;;  %s1067_s3 = inlined_call_operand.vmem [shape: f32[1,128], index: 3, kind: input, shape index: {}]   ;;  %s1068_s4 = inlined_call_operand.hbm [shape: f32[2,128], index: 4, kind: output, shape index: {}]  }
   0x1   :  { %v22_v0 = vld [vmem:[%s1065_s1] sm:$0xff]  ;;  %v23_v1 = vld [vmem:[%s1065_s1 + $0x8] sm:$0xff]  ;;  %v24_v2 = vld [vmem:[%s1065_s1 + $0x10] sm:$0xff] }
   0x2   :  { %v623_v3 = vpack.c.bf16 %v23_v1, %v22_v0  ;;  %v25_v4 = vld [vmem:[%s1065_s1 + $0x18] sm:$0xff]  ;;  %v26_v6 = vld [vmem:[%s1065_s1 + $0x20] sm:$0xff]  ;;  %v27_v7 = vld [vmem:[%s1065_s1 + $0x28] sm:$0xff] }
   0x3   :  { %v627_v5 = vpack.c.bf16 %v25_v4, %v24_v2  ;;  %v631_v8 = vpack.c.bf16 %v27_v7, %v26_v6  ;;  %v18_v9 = vld [vmem:[%s1064_s0] sm:$0xff]  ;;  %v28_v10 = vld [vmem:[%s1065_s1 + $0x30] sm:$0xff]  ;;  %v29_v11 = vld [vmem:[%s1065_s1 + $0x38] sm:$0xff] }
   0x4   :  { %624 = vmatprep.subr.bf16.mxu1 %v623_v3  ;;  %617 = vmatprep.mubr.f32.mxu1 %v18_v9 }
   0x5   :  { %626 = vmatpush3.bf16.msra.mxu1 %v623_v3 }
   0x6   :  { %628 = vmatprep.subr.bf16.mxu1 %v627_v5 }
   0x7   :  { %9 = vsyncpa [#allocation5], 0  ;;  %v635_v12 = vpack.c.bf16 %v29_v11, %v28_v10  ;;  %v30_v13 = vld [vmem:[%s1065_s1 + $0x40] sm:$0xff]  ;;  %v31_v14 = vld [vmem:[%s1065_s1 + $0x48] sm:$0xff]  ;;  %v754_v31 = vmov 0.0|0.0   ;;  %vm127_vm0 = vcmask 261120  }
   0x8   :  { %v639_v15 = vpack.c.bf16 %v31_v14, %v30_v13  ;;  %v32_v16 = vld [vmem:[%s1065_s1 + $0x50] sm:$0xff]  ;;  %v33_v17 = vld [vmem:[%s1065_s1 + $0x58] sm:$0xff]  ;;  %v34_v19 = vld [vmem:[%s1065_s1 + $0x60] sm:$0xff]  ;;  %687 = vmatprep.subr.bf16.mxu0 %v754_v31  ;;  %vm131_vm1 = vcmask 257024   ;;  %vm134_vm2 = vcmask 254976   ;;  %s755_s6 = smov 96  }
   0x9   :  { %630 = vmatpush3.bf16.msra.mxu1 %v627_v5  ;;  %v643_v18 = vpack.c.bf16 %v33_v17, %v32_v16  ;;  %v35_v20 = vld [vmem:[%s1065_s1 + $0x68] sm:$0xff]  ;;  %v36_v22 = vld [vmem:[%s1065_s1 + $0x70] sm:$0xff]  ;;  %v37_v23 = vld [vmem:[%s1065_s1 + $0x78] sm:$0xff]  ;;  %s756_s7 = smov 32   ;;  %s757_s19 = smov 64   ;;  %vm148_vm3 = vcmask 517376  }
   0xa   :  { %632 = vmatprep.subr.bf16.mxu1 %v631_v8  ;;  %v647_v21 = vpack.c.bf16 %v35_v20, %v34_v19  ;;  %v651_v24 = vpack.c.bf16 %v37_v23, %v36_v22  ;;  %v19_v25 = vld [vmem:[%s1064_s0 + $0x8] sm:$0xff]  ;;  %v20_v26 = vld [vmem:[%s1064_s0 + $0x10] sm:$0xff]  ;;  %v21_v27 = vld [vmem:[%s1064_s0 + $0x18] sm:$0xf]  ;;  %vm162_vm4 = vcmask 779776   ;;  %vm176_vm5 = vcmask 1042176  }
   0xb   :  { %v308_v28 = vld [vmem:[%s1066_s2 + $0x100] sm:$0xff]  ;;  %v309_v29 = vld [vmem:[%s1066_s2 + $0x108] sm:$0xff]  ;;  %v310_v30 = vld [vmem:[%s1066_s2 + $0x110] sm:$0xff]  ;;  %vm360_vm6 = vcmask 523264  }
   0xc   :  { %v688_v32 = vpack.c.bf16 %v309_v29, %v308_v28  ;;  %v311_v33 = vld [vmem:[%s1066_s2 + $0x118] sm:$0xff]  ;;  %v292_v34 = vld [vmem:[%s1066_s2 + $0x80] sm:$0xff]  ;;  %v293_v36 = vld [vmem:[%s1066_s2 + $0x88] sm:$0xff] }
   0xd   :  { %634 = vmatpush3.bf16.msra.mxu1 %v631_v8  ;;  %v691_v35 = vpack.c.bf16 %v311_v33, %v310_v30  ;;  %v276_v37 = vld [vmem:[%s1066_s2] sm:$0xff]  ;;  %v277_v38 = vld [vmem:[%s1066_s2 + $0x8] sm:$0xff]  ;;  %v655_v41 = vpack.c.bf16 %v293_v36, %v292_v34  ;;  %v314_v44 = vld [vmem:[%s1066_s2 + $0x130] sm:$0xff] }
   0xe   :  { %636 = vmatprep.subr.bf16.mxu1 %v635_v12  ;;  %689 = vmatpush1.bf16.msra.mxu0 %v688_v32  ;;  %v312_v39 = vld [vmem:[%s1066_s2 + $0x120] sm:$0xff]  ;;  %v313_v40 = vld [vmem:[%s1066_s2 + $0x128] sm:$0xff]  ;;  %v657_v42 = vpack.c.bf16 %v277_v38, %v276_v37  ;;  %v315_v45 = vld [vmem:[%s1066_s2 + $0x138] sm:$0xff] }
   0xf   :  { %690 = vmatprep.subr.bf16.mxu0 %v754_v31  ;;  %v694_v43 = vpack.c.bf16 %v313_v40, %v312_v39  ;;  %v697_v46 = vpack.c.bf16 %v315_v45, %v314_v44  ;;  %v316_v47 = vld [vmem:[%s1066_s2 + $0x140] sm:$0xff]  ;;  %v317_v48 = vld [vmem:[%s1066_s2 + $0x148] sm:$0xff]  ;;  %v294_v49 = vld [vmem:[%s1066_s2 + $0x90] sm:$0xff] }
  0x10   :  { %v700_v51 = vpack.c.bf16 %v317_v48, %v316_v47  ;;  %v295_v52 = vld [vmem:[%s1066_s2 + $0x98] sm:$0xff]  ;;  %v278_v53 = vld [vmem:[%s1066_s2 + $0x10] sm:$0xff]  ;;  %v296_v63 = vld [vmem:[%s1066_s2 + $0xa0] sm:$0xff] }
  0x11   :  { %638 = vmatpush3.bf16.msra.mxu1 %v635_v12  ;;  %v279_v54 = vld [vmem:[%s1066_s2 + $0x18] sm:$0xff]  ;;  %v659_v57 = vpack.c.bf16 %v295_v52, %v294_v49  ;;  %v318_v61 = vld [vmem:[%s1066_s2 + $0x150] sm:$0xff]  ;;  %v297_v3 = vld [vmem:[%s1066_s2 + $0xa8] sm:$0xff] }
  0x12   :  { %640 = vmatprep.subr.bf16.mxu1 %v639_v15  ;;  %692 = vmatpush1.bf16.msra.mxu0 %v691_v35  ;;  %v661_v58 = vpack.c.bf16 %v279_v54, %v278_v53  ;;  %v319_v62 = vld [vmem:[%s1066_s2 + $0x158] sm:$0xff]  ;;  %v280_v4 = vld [vmem:[%s1066_s2 + $0x20] sm:$0xff]  ;;  %v281_v5 = vld [vmem:[%s1066_s2 + $0x28] sm:$0xff]  ;;  %v663_v7 = vpack.c.bf16 %v297_v3, %v296_v63 }
  0x13   :  { %693 = vmatprep.subr.bf16.mxu0 %v754_v31  ;;  %v703_v2 = vpack.c.bf16 %v319_v62, %v318_v61  ;;  %v665_v8 = vpack.c.bf16 %v281_v5, %v280_v4  ;;  %v320_v9 = vld [vmem:[%s1066_s2 + $0x160] sm:$0xff]  ;;  %v321_v10 = vld [vmem:[%s1066_s2 + $0x168] sm:$0xff]  ;;  %v298_v11 = vld [vmem:[%s1066_s2 + $0xb0] sm:$0xff] }
  0x14   :  { %v706_v12 = vpack.c.bf16 %v321_v10, %v320_v9  ;;  %v299_v13 = vld [vmem:[%s1066_s2 + $0xb8] sm:$0xff]  ;;  %v282_v14 = vld [vmem:[%s1066_s2 + $0x30] sm:$0xff]  ;;  %v284_v29 = vld [vmem:[%s1066_s2 + $0x40] sm:$0xff] }
  0x15   :  { %642 = vmatpush3.bf16.msra.mxu1 %v639_v15  ;;  %v283_v15 = vld [vmem:[%s1066_s2 + $0x38] sm:$0xff]  ;;  %v322_v22 = vld [vmem:[%s1066_s2 + $0x170] sm:$0xff]  ;;  %v285_v30 = vld [vmem:[%s1066_s2 + $0x48] sm:$0xff] }
  0x16   :  { %644 = vmatprep.subr.bf16.mxu1 %v643_v18  ;;  %695 = vmatpush1.bf16.msra.mxu0 %v694_v43  ;;  %v669_v19 = vpack.c.bf16 %v283_v15, %v282_v14  ;;  %v323_v23 = vld [vmem:[%s1066_s2 + $0x178] sm:$0xff]  ;;  %v673_v34 = vpack.c.bf16 %v285_v30, %v284_v29  ;;  %v324_v37 = vld [vmem:[%s1066_s2 + $0x180] sm:$0xff]  ;;  %v325_v38 = vld [vmem:[%s1066_s2 + $0x188] sm:$0xff]  ;;  %v758_v15 = vmov 1983009808  }
  0x17   :  { %696 = vmatprep.subr.bf16.mxu0 %v754_v31  ;;  %v712_v39 = vpack.c.bf16 %v325_v38, %v324_v37  ;;  %v302_v40 = vld [vmem:[%s1066_s2 + $0xd0] sm:$0xff]  ;;  %v287_v45 = vld [vmem:[%s1066_s2 + $0x58] sm:$0xff]  ;;  %v305_v53 = vld [vmem:[%s1066_s2 + $0xe8] sm:$0xff] }
  0x18   :  { %v286_v44 = vld [vmem:[%s1066_s2 + $0x50] sm:$0xff]  ;;  %v327_v49 = vld [vmem:[%s1066_s2 + $0x198] sm:$0xff]  ;;  %v288_v54 = vld [vmem:[%s1066_s2 + $0x60] sm:$0xff] }
  0x19   :  { %646 = vmatpush3.bf16.msra.mxu1 %v643_v18  ;;  %v667_v18 = vpack.c.bf16 %v299_v13, %v298_v11  ;;  %v677_v47 = vpack.c.bf16 %v287_v45, %v286_v44  ;;  %v326_v48 = vld [vmem:[%s1066_s2 + $0x190] sm:$0xff]  ;;  %v307_v61 = vld [vmem:[%s1066_s2 + $0xf8] sm:$0xff] }
  0x1a   :  { %648 = vmatprep.subr.bf16.mxu1 %v647_v21  ;;  %698 = vmatpush1.bf16.msra.mxu0 %v697_v46  ;;  %v715_v52 = vpack.c.bf16 %v327_v49, %v326_v48  ;;  %v290_v62 = vld [vmem:[%s1066_s2 + $0x70] sm:$0xff]  ;;  %v291_v63 = vld [vmem:[%s1066_s2 + $0x78] sm:$0xff] }
  0x1b   :  { %699 = vmatprep.subr.bf16.mxu0 %v754_v31  ;;  %v685_v3 = vpack.c.bf16 %v291_v63, %v290_v62  ;;  %v330_v5 = vld [vmem:[%s1066_s2 + $0x1b0] sm:$0xff] }
  0x1d   :  { %650 = vmatpush3.bf16.msra.mxu1 %v647_v21 }
  0x1e   :  { %652 = vmatprep.subr.bf16.mxu1 %v651_v24  ;;  %701 = vmatpush1.bf16.msra.mxu0 %v700_v51 }
  0x1f   :  { %702 = vmatprep.subr.bf16.mxu0 %v754_v31 }
  0x21   :  { %654 = vmatpush3.bf16.msra.mxu1 %v651_v24  ;;  %v709_v24 = vpack.c.bf16 %v323_v23, %v322_v22 }
  0x22   :  { %656 = vmatprep.subr.bf16.mxu1 %v655_v41  ;;  %704 = vmatpush1.bf16.msra.mxu0 %v703_v2  ;;  %v303_v41 = vld [vmem:[%s1066_s2 + $0xd8] sm:$0xff] }
  0x23   :  { %705 = vmatprep.subr.bf16.mxu0 %v754_v31  ;;  %v675_v43 = vpack.c.bf16 %v303_v41, %v302_v40 }
  0x24   :  { %618 = vmatmul.mubr.f32.vlgmr.msra.gmra.mrb[0].mxu1 %v19_v25  ;;  %v300_v25 = vld [vmem:[%s1066_s2 + $0xc0] sm:$0xff] }
  0x25   :  { %620 = vmatprep.mubr.f32.mxu1 %v20_v26  ;;  %658 = vmatpush3.bf16.msra.mxu1 %v657_v42  ;;  %v301_v26 = vld [vmem:[%s1066_s2 + $0xc8] sm:$0xff] }
  0x26   :  { %660 = vmatprep.subr.bf16.mxu1 %v659_v57  ;;  %707 = vmatpush1.bf16.msra.mxu0 %v706_v12  ;;  %v671_v28 = vpack.c.bf16 %v301_v26, %v300_v25 }
  0x27   :  { %708 = vmatprep.subr.bf16.mxu0 %v754_v31 }
  0x28   :  { %621 = vmatmul.mubr.f32.gmra.mrb[2].mxu1 %v21_v27 }
  0x29   :  { %662 = vmatpush3.bf16.msra.mxu1 %v661_v58  ;;  %v328_v58 = vld [vmem:[%s1066_s2 + $0x1a0] sm:$0xff] }
  0x2a   :  { %664 = vmatprep.subr.bf16.mxu1 %v663_v7  ;;  %710 = vmatpush1.bf16.msra.mxu0 %v709_v24 }
  0x2b   :  { %711 = vmatprep.subr.bf16.mxu0 %v754_v31 }
  0x2d   :  { %666 = vmatpush3.bf16.msra.mxu1 %v665_v8 }
  0x2e   :  { %668 = vmatprep.subr.bf16.mxu1 %v667_v18  ;;  %713 = vmatpush1.bf16.msra.mxu0 %v712_v39 }
  0x2f   :  { %714 = vmatprep.subr.bf16.mxu0 %v754_v31 }
  0x31   :  { %670 = vmatpush3.bf16.msra.mxu1 %v669_v19 }
  0x32   :  { %672 = vmatprep.subr.bf16.mxu1 %v671_v28  ;;  %716 = vmatpush1.bf16.msra.mxu0 %v715_v52 }
  0x33   :  { %717 = vmatprep.subr.bf16.mxu0 %v754_v31 }
  0x35   :  { %674 = vmatpush3.bf16.msra.mxu1 %v673_v34 }
  0x36   :  { %676 = vmatprep.subr.bf16.mxu1 %v675_v43 }
  0x39   :  { %678 = vmatpush3.bf16.msra.mxu1 %v677_v47 }
  0xf7   :  { %v619_v50 = vpop.f32.mrb[0].mxu1 }
  0xf8   :  { %v124_v55 = vmax.f32 %v619_v50, 0.0  ;;  %v104_v56 = vpop.f32.mrb[1].mxu1  ;;  %v304_v50 = vld [vmem:[%s1066_s2 + $0xe0] sm:$0xff] }
  0xf9   :  { %v123_v59 = vmax.f32 %v104_v56, 0.0  ;;  %v679_v56 = vpack.c.bf16 %v305_v53, %v304_v50 }
  0xfa   :  { %129 = vst.msk [vmem:[#allocation2 + $0x8] sm:$0xff] %vm127_vm0, %v124_v55  ;;  %v289_v55 = vld [vmem:[%s1066_s2 + $0x68] sm:$0xff] }
  0xfb   :  { %128 = vst.msk [vmem:[#allocation2] sm:$0xff] %vm127_vm0, %v123_v59  ;;  %v622_v60 = vpop.f32.mrb[2].mxu1  ;;  %v681_v57 = vpack.c.bf16 %v289_v55, %v288_v54  ;;  %v329_v59 = vld [vmem:[%s1066_s2 + $0x1a8] sm:$0xff]  ;;  %680 = vmatprep.subr.bf16.mxu1 %v679_v56 }
  0xfc   :  { %v126_v0 = vmax.f32 %v622_v60, 0.0  ;;  %v114_v1 = vpop.f32.mrb[3].mxu1  ;;  %v306_v60 = vld [vmem:[%s1066_s2 + $0xf0] sm:$0xff] }
  0xfd   :  { %v125_v6 = vmax.f32 %v114_v1, 0.0  ;;  %v683_v1 = vpack.c.bf16 %v307_v61, %v306_v60  ;;  %682 = vmatpush3.bf16.msra.mxu1 %v681_v57 }
  0xfe   :  { %132 = vst.msk [vmem:[#allocation2 + $0x18] sm:$0xf] %vm131_vm1, %v126_v0  ;;  %v718_v0 = vpack.c.bf16 %v329_v59, %v328_v58 }
  0xff   :  { %130 = vst.msk [vmem:[#allocation2 + $0x10] sm:$0xff] %vm127_vm0, %v125_v6  ;;  %684 = vmatprep.subr.bf16.mxu1 %v683_v1  ;;  %v331_v6 = vld [vmem:[%s1066_s2 + $0x1b8] sm:$0xff] }
 0x100   :  { %719 = vmatpush1.bf16.msra.mxu0 %v718_v0  ;;  %v721_v7 = vpack.c.bf16 %v331_v6, %v330_v5 }
 0x101   :  { %v523_v16 = vld.sshfl [vmem:[#allocation2 + $0xe] sm:$0x3 pattern:$0x76325410]  ;;  %v178_v17 = vld [vmem:[#allocation2 + $0x8] sm:$0x3]  ;;  %720 = vmatprep.subr.bf16.mxu0 %v754_v31  ;;  %686 = vmatpush3.bf16.msra.mxu1 %v685_v3 }
 0x102   :  { %215 = vrot.lane.b32.xlu1 %v523_v16, %s755_s6  ;;  %v521_v20 = vld.sshfl [vmem:[#allocation2 + $0xa] sm:$0x3 pattern:$0x76325410]  ;;  %179 = vst.msk [vmem:[#allocation3 + $0x2] sm:$0x3] %vm134_vm2, %v178_v17  ;;  %v342_v16 = vunpack.c.l.s4 %v758_v15  ;;  %v344_v17 = vlaneseq }
 0x103   :  { %v133_v21 = vld [vmem:[#allocation2] sm:$0x3]  ;;  %189 = vrot.lane.b32.xlu0 %v521_v20, %s756_s7  ;;  %v519_v27 = vld.sshfl [vmem:[#allocation2 + $0x4] sm:$0x3 pattern:$0x76325410] }
 0x104   :  { %135 = vst.msk [vmem:[#allocation3] sm:$0x3] %vm134_vm2, %v133_v21  ;;  %v522_v32 = vld.sshfl [vmem:[#allocation2 + $0xc] sm:$0x3 pattern:$0x76325410]  ;;  %722 = vmatpush1.bf16.msra.mxu0 %v721_v7  ;;  %v343_v20 = vunpack.c.0.s8 %v342_v16 }
 0x105   :  { %v260_v36 = vld [vmem:[#allocation2 + $0x18] sm:$0x3]  ;;  %v518_v42 = vld.sshfl [vmem:[#allocation2 + $0x2] sm:$0x3 pattern:$0x76325410] }
 0x106   :  { %159 = vrot.lane.b32.xlu1 %v519_v27, %s757_s19  ;;  %v219_v33 = vld [vmem:[#allocation2 + $0x10] sm:$0x3]  ;;  %v524_v35 = vld.sshfl [vmem:[#allocation2 + $0x12] sm:$0x3 pattern:$0x76325410] }
 0x107   :  { %202 = vrot.lane.b32.xlu0 %v522_v32, %s757_s19  ;;  %220 = vst.msk [vmem:[#allocation3 + $0x4] sm:$0x3] %vm134_vm2, %v219_v33  ;;  %261 = vst.msk [vmem:[#allocation3 + $0x6] sm:$0x3] %vm134_vm2, %v260_v36  ;;  %v345_v21 = vshrl.u32 %v344_v17, 7 }
 0x108   :  { %v525_v46 = vld.sshfl [vmem:[#allocation2 + $0x14] sm:$0x3 pattern:$0x76325410]  ;;  %v528_v32 = vld [vmem:[%s1067_s3] ss:$0 sm:$0xff] }
 0x109   :  { %v520_v51 = vld.sshfl [vmem:[#allocation2 + $0x6] sm:$0x3 pattern:$0x76325410]  ;;  %v346_v22 = vsub.s32 %v343_v20, %v345_v21 }
 0x10a   :  { %230 = vrot.lane.b32.xlu1 %v524_v35, %s756_s7  ;;  %v527_v2 = vld.sshfl [vmem:[#allocation2 + $0x1a] sm:$0x3 pattern:$0x76325410] }
 0x10b   :  { %145 = vrot.lane.b32.xlu0 %v518_v42, %s756_s7  ;;  %v526_v4 = vld.sshfl [vmem:[#allocation2 + $0x16] sm:$0x3 pattern:$0x76325410] }
 0x10e   :  { %243 = vrot.lane.b32.xlu1 %v525_v46, %s757_s19 }
 0x10f   :  { %173 = vrot.lane.b32.xlu0 %v520_v51, %s755_s6 }
 0x112   :  { %271 = vrot.lane.b32.xlu1 %v527_v2, %s756_s7  ;;  %s759_s7 = smov [#allocation4]  }
 0x113   :  { %256 = vrot.lane.b32.xlu0 %v526_v4, %s755_s6  ;;  %s510_s9 = sshll.u32 %s759_s7, 4  ;;  %s511_s9 = int_to_ptr.vmem [resolvable:$true] %s510_s9 }
 0x114   :  { %s730_s0 = scalar_lea.vmem %s511_s9, 32  ;;  %p735_p1 = scmp.lt.s32.totalorder %s511_s9, %s511_s9 }
 0x115   :  { %p731_p0 = scmp.ne.s32.totalorder %s511_s9, %s730_s0  ;;  %p736_p2 = scmp.lt.s32.totalorder %s730_s0, %s730_s0 }
 0x117   :  { %p737_p3 = por %p736_p2, %p735_p1 }
 0x119   :  { %p738_p4 = pnand %p737_p3, %p731_p0 }
 0x174   :  { %v216_v8 = vpop.permute.xlu1 %215 }
 0x175   :  { %v190_v9 = vpop.permute.xlu0 %189 }
 0x176   :  { %192 = vst.msk [vmem:[#allocation3 + $0x2] sm:$0x3] %vm148_vm3, %v190_v9 }
 0x178   :  { %v160_v10 = vpop.permute.xlu1 %159 }
 0x179   :  { %v203_v11 = vpop.permute.xlu0 %202 }
 0x17a   :  { %205 = vst.msk [vmem:[#allocation3 + $0x2] sm:$0x3] %vm162_vm4, %v203_v11 }
 0x17b   :  { %218 = vst.msk [vmem:[#allocation3 + $0x2] sm:$0x3] %vm176_vm5, %v216_v8 }
 0x17c   :  { %v231_v12 = vpop.permute.xlu1 %230 }
 0x17d   :  { %v146_v13 = vpop.permute.xlu0 %145  ;;  %233 = vst.msk [vmem:[#allocation3 + $0x4] sm:$0x3] %vm148_vm3, %v231_v12 }
 0x17e   :  { %149 = vst.msk [vmem:[#allocation3] sm:$0x3] %vm148_vm3, %v146_v13 }
 0x17f   :  { %163 = vst.msk [vmem:[#allocation3] sm:$0x3] %vm162_vm4, %v160_v10 }
 0x180   :  { %v244_v31 = vpop.permute.xlu1 %243 }
 0x181   :  { %v174_v14 = vpop.permute.xlu0 %173  ;;  %246 = vst.msk [vmem:[#allocation3 + $0x4] sm:$0x3] %vm162_vm4, %v244_v31 }
 0x182   :  { %177 = vst.msk [vmem:[#allocation3] sm:$0x3] %vm176_vm5, %v174_v14 }
 0x184   :  { %v272_v18 = vpop.permute.xlu1 %271 }
 0x185   :  { %v257_v19 = vpop.permute.xlu0 %256  ;;  %274 = vst.msk [vmem:[#allocation3 + $0x6] sm:$0x3] %vm148_vm3, %v272_v18 }
 0x186   :  { %259 = vst.msk [vmem:[#allocation3 + $0x4] sm:$0x3] %vm176_vm5, %v257_v19 }
 0x18d   :  { %v275_v23 = vld [vmem:[#allocation3] sm:$0xff] }
 0x18e   :  { %v347_v24 = vrot.slane %v275_v23, %v346_v22  ;;  %v340_v25 = vcombine.high %v275_v23, %v275_v23 }
 0x190   :  { %v355_v26 = vcombine.high %v347_v24, %v347_v24  ;;  %v354_v27 = vrot.slane %v340_v25, %v346_v22 }
 0x192   :  { %427 = vmatprep.mubr.f32.mxu1 %v355_v26  ;;  %v356_v28 = vcombine.high %v354_v27, %v354_v27 }
 0x193   :  { %428 = vmatmul.mubr.f32.vlgmr.msra.gmra.mrb[4].mxu1 %v347_v24 }
 0x194   :  { %529 = vmatprep.mubr.msk.f32.mxu0 %vm360_vm6, %v356_v28 }
 0x195   :  { %498 = vmatmul.mubr.f32.vlgmr.msra.gmra.mrb[0].mxu0 %v354_v27 }
 0x266   :  { %v582_v29 = vpop.f32.mrb[4].mxu1 }
 0x267   :  { %v583_v30 = vpop.f32.mrb[5].mxu1 }
 0x268   :  { %v584_v33 = vadd.f32 %v583_v30, %v582_v29  ;;  %v499_v34 = vpop.f32.mrb[0].mxu0 }
 0x269   :  { %v501_v35 = vpop.f32.mrb[1].mxu0 }
 0x26a   :  { %v430_v36 = vadd.f32 %v584_v33, %v528_v32 }
 0x26c   :  { %v500_v37 = vadd.f32 %v499_v34, %v430_v36 }
 0x26e   :  { %503 = vst [vmem:[#allocation4] sm:$0x3] %v500_v37 }
 0x26f   :  { %741 = shalt.err (!%p738_p4)
}
 0x270   :  { %s742_s3 = scalar_lea.hbm %s1068_s4, 32 }
 0x271   :  { %p743_p5 = scmp.ne.s32.totalorder %s1068_s4, %s742_s3  ;;  %p746_p6 = scmp.lt.u32.totalorder %s742_s3, %s1068_s4 }
 0x273   :  { %p748_p7 = pnand %p746_p6, %p743_p5 }
 0x275   :  { %751 = shalt.err (!%p748_p7)
}
 0x276   :  { %513 = dma.vmem_to_hbm [thread:$0]  %s511_s9, 32, %s1068_s4, [#allocation5]  }
 0x277   :  { %752 = dma.done.wait [#allocation5], 32  }
 0x278   :  { %753 = vsyncadd [#allocation5], 4294967264 }
 0x279   :  { %517 = vsyncpa [#allocation5], 1 }

</bundles_post_ra>
